<compile_context>
chip_gen: v5e
topology: v5e:2x2
jax: 0.10.0
libtpu: 0.0.40
codegen_flags: <defaults>
</compile_context>

<pallas_src>
import functools

import jax
import jax.numpy as jnp
from jax.experimental import pallas as pl
from jax.experimental.pallas import tpu as pltpu


def _round_up(x, m):
    return (x + m - 1) // m * m


def _ceil_div(a, b):
    return (a + b - 1) // b


def _label_smoothing_kernel(x_ref, tgt_ref, out_ref, acc_ref, *, confidence,
                            smooth_val, n_valid, inv_n, need_mask):
    step = pl.program_id(1)
    n_steps = pl.num_programs(1)

    @pl.when(step == 0)
    def _():
        acc_ref[...] = jnp.zeros_like(acc_ref)

    x = x_ref[...].astype(jnp.float32)          # (C, T) logits, f32 math in VMEM
    tgt = tgt_ref[...]                          # (1, T) int32 labels
    c, t = x.shape

    # Numerically-stable log-softmax over the class (sublane) axis.
    m = jnp.max(x, axis=0, keepdims=True)                          # (1, T)
    z = x - m                                                      # (C, T)
    lse = jnp.log(jnp.sum(jnp.exp(z), axis=0, keepdims=True))      # (1, T)
    sum_z = jnp.sum(z, axis=0, keepdims=True)                      # (1, T)

    # logp[target] via a sublane-iota compare (pure VPU, no gather).
    cls = jax.lax.broadcasted_iota(jnp.int32, (c, t), 0)
    z_tgt = jnp.sum(jnp.where(cls == tgt, z, 0.0), axis=0, keepdims=True)

    # true_dist = smooth_val + (confidence - smooth_val) * onehot   (scatter_ overwrite)
    # per-row loss = -(smooth_val * sum_c logp + (confidence - smooth_val) * logp[target])
    #   with sum_c logp = sum_z - C*lse   and   logp[target] = z_tgt - lse
    loss = -(smooth_val * (sum_z - c * lse)
             + (confidence - smooth_val) * (z_tgt - lse))           # (1, T)

    if need_mask:  # static python bool: emitted only for ragged / clamped tiles
        tile_idx = pl.program_id(0) * n_steps + step
        rows = tile_idx * t + jax.lax.broadcasted_iota(jnp.int32, (1, t), 1)
        loss = jnp.where(rows < n_valid, loss, 0.0)   # select: OOB garbage cannot leak

    # Steady state: lane-dense VPU accumulate only (no XLU reduce, no masked store).
    acc_ref[...] += loss

    @pl.when(step == n_steps - 1)
    def _():
        # Collapse to this slice's partial mean only once, in the epilogue.
        part = jnp.sum(acc_ref[...], axis=1, keepdims=True) * inv_n     # (1, 1)
        out_ref[...] = part.reshape(1, 1, 1) + jnp.zeros_like(out_ref)  # (1, 8, 128)


def label_smoothing_loss(pred, target, *, classes=5, smoothing=0.0,
                         tile_rows=None, num_slices=2):
    """pred: (N, C) float (f32/bf16/f16), target: (N,) int -> scalar f32 loss."""
    n, c = pred.shape
    assert c == classes, (c, classes)
    confidence = 1.0 - float(smoothing)
    smooth_val = float(smoothing) / (classes - 1) if classes > 1 else 0.0

    # Lane-dense layout: classes -> sublanes, batch rows -> lanes.
    # TODO(synk): ideally the producer emits (C, N) logits directly; this is one
    # extra transpose pass over the logits (kept in the input dtype, no upcast).
    pred_t = jnp.transpose(pred)                      # (C, N)
    tgt = target.astype(jnp.int32).reshape(1, n)      # (1, N)

    # Outer parallel slices: sharded across TensorCores on multi-TC chips (v7x),
    # plain serial iteration on v5e/v6e (near-zero cost there).
    p_slices = max(1, int(num_slices))

    # Row tile: large enough to amortize per-step overhead (~3 MiB of real data),
    # a multiple of 128 (lane axis), capped by the per-slice share of N.
    # VMEM footprint ≈ 160 B/row incl. double buffering -> 128k rows ≈ 20 MiB.
    if tile_rows is None:
        tile_rows = 131072
    tile_n = _round_up(min(int(tile_rows), _ceil_div(n, p_slices)), 128)

    total_tiles = _ceil_div(n, tile_n)
    steps = _ceil_div(total_tiles, p_slices)
    need_mask = (p_slices * steps * tile_n != n)

    kernel = functools.partial(
        _label_smoothing_kernel,
        confidence=confidence,
        smooth_val=smooth_val,
        n_valid=n,
        inv_n=1.0 / n,
        need_mask=need_mask,
    )

    def _tile_map(p, i):
        # Clamp fully out-of-range tiles onto the last real tile; their rows are
        # masked out in-kernel, so the (redundant) data never contributes.
        return (0, jnp.minimum(p * steps + i, total_tiles - 1))

    out = pl.pallas_call(
        kernel,
        out_shape=jax.ShapeDtypeStruct((p_slices, 8, 128), jnp.float32),
        grid_spec=pltpu.PrefetchScalarGridSpec(
            num_scalar_prefetch=0,
            grid=(p_slices, steps),
            in_specs=[
                pl.BlockSpec((c, tile_n), _tile_map),
                pl.BlockSpec((1, tile_n), _tile_map),
            ],
            out_specs=pl.BlockSpec((1, 8, 128), lambda p, i: (p, 0, 0)),
            scratch_shapes=[pltpu.VMEM((1, tile_n), jnp.float32)],
        ),
        compiler_params=pltpu.CompilerParams(
            # outer axis: independent slices (megacore on v7x); inner: reduction
            dimension_semantics=("parallel", "arbitrary"),
            # 20 MiB footprint at the default tile; raise v5e's 16 MiB scoped
            # default, stays well under v7x's 64 MiB physical VMEM.
            vmem_limit_bytes=32 * 1024 * 1024,
        ),
    )(pred_t, tgt)

    # Sum the per-slice partial means (each already scaled by 1/N).
    return jnp.sum(out[:, 0, 0])


def _reference(pred, target, *, classes=5, smoothing=0.0):
    # Pure-JAX port of the PyTorch forward.
    logp = jax.nn.log_softmax(pred.astype(jnp.float32), axis=-1)
    onehot = jax.nn.one_hot(target, classes, dtype=jnp.float32)
    smooth_val = smoothing / (classes - 1) if classes > 1 else 0.0
    true_dist = smooth_val * (1.0 - onehot) + (1.0 - smoothing) * onehot
    return jnp.mean(jnp.sum(-true_dist * logp, axis=-1))


if __name__ == "__main__":
    classes = 5
    key = jax.random.PRNGKey(0)

    # (batch, smoothing, tile_rows): single ragged tile, smoothed, multi-step
    # grid with a clamped tail tile, and an exactly-divisible no-mask path.
    cases = [
        (8, 0.0, None),     # tiny, one slice fully masked
        (13, 0.1, None),    # ragged single tile
        (300, 0.1, 128),    # multi-step accumulation + clamped OOB tile
        (1024, 0.1, 128),   # even 2x4 grid, no masking
    ]
    for batch, smoothing, tile_rows in cases:
        key, k_x, k_t = jax.random.split(key, 3)
        pred = jax.random.normal(k_x, (batch, classes), dtype=jnp.float32)
        target = jax.random.randint(k_t, (batch,), 0, classes, dtype=jnp.int32)

        out = label_smoothing_loss(
            pred, target, classes=classes, smoothing=smoothing, tile_rows=tile_rows
        )
        out = jax.block_until_ready(out)
        ref = _reference(pred, target, classes=classes, smoothing=smoothing)
        assert jnp.allclose(out, ref, atol=1e-5, rtol=1e-5), (
            batch, smoothing, float(out), float(ref))

    print("KERNEL_OK")
</pallas_src>

<mosaic_0001>
module attributes {stable_mosaic.version = 11 : i64} {
  func.func @_label_smoothing_kernel(%arg0: i32, %arg1: i32, %arg2: memref<5x128xf32, #tpu.memory_space<vmem>>, %arg3: memref<1x128xi32, #tpu.memory_space<vmem>>, %arg4: memref<1x8x128xf32, #tpu.memory_space<vmem>>, %arg5: memref<1x128xf32, #tpu.memory_space<vmem>>) attributes {dimension_semantics = [#tpu.dimension_semantics<parallel>, #tpu.dimension_semantics<arbitrary>], iteration_bounds = array<i64: 2, 1>, scalar_prefetch = 0 : i64, scratch_operands = 1 : i64, tpu.core_type = #tpu.core_type<tc>, window_params = [{transform_indices = @transform_0, window_bounds = array<i64: 5, 128>}, {transform_indices = @transform_1, window_bounds = array<i64: 1, 128>}, {transform_indices = @transform_2, window_bounds = array<i64: 1, 8, 128>}]} {
    %c0_i32 = arith.constant 0 : i32
    %0 = arith.cmpi eq, %arg1, %c0_i32 : i32
    %1 = arith.extui %0 : i1 to i32
    %c0_i32_0 = arith.constant 0 : i32
    %2 = arith.cmpi ne, %1, %c0_i32_0 : i32
    scf.if %2 {
      %cst_19 = arith.constant 0.000000e+00 : f32
      %49 = vector.broadcast %cst_19 : f32 to vector<1x128xf32>
      %c0_20 = arith.constant 0 : index
      %c0_21 = arith.constant 0 : index
      %50 = vector.load %arg5[%c0_20, %c0_21] : memref<1x128xf32, #tpu.memory_space<vmem>>, vector<1x128xf32>
      tpu.vector_store %arg5[%c0_20, %c0_21], %49 {strides = array<i32>} : memref<1x128xf32, #tpu.memory_space<vmem>>, vector<1x128xf32>,
    } else {
    }
    %c0 = arith.constant 0 : index
    %c0_1 = arith.constant 0 : index
    %3 = vector.load %arg2[%c0, %c0_1] : memref<5x128xf32, #tpu.memory_space<vmem>>, vector<5x128xf32>
    %c0_2 = arith.constant 0 : index
    %c0_3 = arith.constant 0 : index
    %4 = vector.load %arg3[%c0_2, %c0_3] : memref<1x128xi32, #tpu.memory_space<vmem>>, vector<1x128xi32>
    %cst = arith.constant dense<0xFF800000> : vector<128xf32>
    %5 = vector.multi_reduction <maximumf>, %3, %cst [0] : vector<5x128xf32> to vector<128xf32>
    %6 = vector.shape_cast %5 : vector<128xf32> to vector<1x128xf32>
    %7 = vector.broadcast %6 : vector<1x128xf32> to vector<5x128xf32>
    %8 = arith.subf %3, %7 : vector<5x128xf32>
    %9 = math.exp %8 : vector<5x128xf32>
    %cst_4 = arith.constant dense<0.000000e+00> : vector<128xf32>
    %10 = vector.multi_reduction <add>, %9, %cst_4 [0] : vector<5x128xf32> to vector<128xf32>
    %11 = vector.shape_cast %10 : vector<128xf32> to vector<1x128xf32>
    %12 = math.log %11 : vector<1x128xf32>
    %cst_5 = arith.constant dense<0.000000e+00> : vector<128xf32>
    %13 = vector.multi_reduction <add>, %8, %cst_5 [0] : vector<5x128xf32> to vector<128xf32>
    %14 = vector.shape_cast %13 : vector<128xf32> to vector<1x128xf32>
    %15 = tpu.iota {dimensions = array<i32: 0>} : vector<5x128xi32>
    %16 = vector.broadcast %4 : vector<1x128xi32> to vector<5x128xi32>
    %17 = arith.cmpi eq, %15, %16 : vector<5x128xi32>
    %cst_6 = arith.constant 0.000000e+00 : f32
    %18 = vector.broadcast %cst_6 : f32 to vector<5x128xf32>
    %19 = arith.select %17, %8, %18 : vector<5x128xi1>, vector<5x128xf32>
    %cst_7 = arith.constant dense<0.000000e+00> : vector<128xf32>
    %20 = vector.multi_reduction <add>, %19, %cst_7 [0] : vector<5x128xf32> to vector<128xf32>
    %21 = vector.shape_cast %20 : vector<128xf32> to vector<1x128xf32>
    %cst_8 = arith.constant 5.000000e+00 : f32
    %22 = vector.broadcast %cst_8 : f32 to vector<1x128xf32>
    %23 = arith.mulf %22, %12 : vector<1x128xf32>
    %24 = arith.subf %14, %23 : vector<1x128xf32>
    %cst_9 = arith.constant 0.000000e+00 : f32
    %25 = vector.broadcast %cst_9 : f32 to vector<1x128xf32>
    %26 = arith.mulf %25, %24 : vector<1x128xf32>
    %27 = arith.subf %21, %12 : vector<1x128xf32>
    %cst_10 = arith.constant 1.000000e+00 : f32
    %28 = vector.broadcast %cst_10 : f32 to vector<1x128xf32>
    %29 = arith.mulf %28, %27 : vector<1x128xf32>
    %30 = arith.addf %26, %29 : vector<1x128xf32>
    %cst_11 = arith.constant 0.000000e+00 : f32
    %31 = vector.broadcast %cst_11 : f32 to vector<1x128xf32>
    %32 = arith.subf %31, %30 : vector<1x128xf32>
    %c1_i32 = arith.constant 1 : i32
    %33 = arith.muli %arg0, %c1_i32 : i32
    %34 = arith.addi %33, %arg1 : i32
    %c128_i32 = arith.constant 128 : i32
    %35 = arith.muli %34, %c128_i32 : i32
    %36 = tpu.iota {dimensions = array<i32: 1>} : vector<1x128xi32>
    %37 = vector.broadcast %35 : i32 to vector<1x128xi32>
    %38 = arith.addi %37, %36 : vector<1x128xi32>
    %c8_i32 = arith.constant 8 : i32
    %39 = vector.broadcast %c8_i32 : i32 to vector<1x128xi32>
    %40 = arith.cmpi slt, %38, %39 : vector<1x128xi32>
    %cst_12 = arith.constant 0.000000e+00 : f32
    %41 = vector.broadcast %cst_12 : f32 to vector<1x128xf32>
    %42 = arith.select %40, %32, %41 : vector<1x128xi1>, vector<1x128xf32>
    %c0_13 = arith.constant 0 : index
    %c0_14 = arith.constant 0 : index
    %43 = vector.load %arg5[%c0_13, %c0_14] : memref<1x128xf32, #tpu.memory_space<vmem>>, vector<1x128xf32>
    %44 = arith.addf %43, %42 : vector<1x128xf32>
    %c0_15 = arith.constant 0 : index
    %c0_16 = arith.constant 0 : index
    %45 = vector.load %arg5[%c0_15, %c0_16] : memref<1x128xf32, #tpu.memory_space<vmem>>, vector<1x128xf32>
    tpu.vector_store %arg5[%c0_15, %c0_16], %44 {strides = array<i32>} : memref<1x128xf32, #tpu.memory_space<vmem>>, vector<1x128xf32>,
    %c0_i32_17 = arith.constant 0 : i32
    %46 = arith.cmpi eq, %arg1, %c0_i32_17 : i32
    %47 = arith.extui %46 : i1 to i32
    %c0_i32_18 = arith.constant 0 : i32
    %48 = arith.cmpi ne, %47, %c0_i32_18 : i32
    scf.if %48 {
      %c0_19 = arith.constant 0 : index
      %c0_20 = arith.constant 0 : index
      %49 = vector.load %arg5[%c0_19, %c0_20] : memref<1x128xf32, #tpu.memory_space<vmem>>, vector<1x128xf32>
      %cst_21 = arith.constant dense<0.000000e+00> : vector<1xf32>
      %50 = vector.multi_reduction <add>, %49, %cst_21 [1] : vector<1x128xf32> to vector<1xf32>
      %51 = vector.shape_cast %50 : vector<1xf32> to vector<1x1xf32>
      %cst_22 = arith.constant 1.250000e-01 : f32
      %52 = vector.broadcast %cst_22 : f32 to vector<1x1xf32>
      %53 = arith.mulf %51, %52 : vector<1x1xf32>
      %54 = vector.shape_cast %53 : vector<1x1xf32> to vector<1x1x1xf32>
      %cst_23 = arith.constant 0.000000e+00 : f32
      %55 = vector.broadcast %cst_23 : f32 to vector<1x8x128xf32>
      %56 = vector.broadcast %54 : vector<1x1x1xf32> to vector<1x8x128xf32>
      %57 = arith.addf %56, %55 : vector<1x8x128xf32>
      %c0_24 = arith.constant 0 : index
      %c0_25 = arith.constant 0 : index
      %c0_26 = arith.constant 0 : index
      %58 = vector.load %arg4[%c0_24, %c0_25, %c0_26] : memref<1x8x128xf32, #tpu.memory_space<vmem>>, vector<1x8x128xf32>
      tpu.vector_store %arg4[%c0_24, %c0_25, %c0_26], %57 {strides = array<i32>} : memref<1x8x128xf32, #tpu.memory_space<vmem>>, vector<1x8x128xf32>,
    } else {
    }
    return
  }
  func.func @transform_0(%arg0: i32, %arg1: i32) -> (i32, i32) {
    %c1_i32 = arith.constant 1 : i32
    %0 = arith.muli %arg0, %c1_i32 : i32
    %1 = arith.addi %0, %arg1 : i32
    %c0_i32 = arith.constant 0 : i32
    %2 = arith.minsi %1, %c0_i32 : i32
    %c0_i32_0 = arith.constant 0 : i32
    %c0_i32_1 = arith.constant 0 : i32
    return %c0_i32_0, %2 : i32, i32
  }
  func.func @transform_1(%arg0: i32, %arg1: i32) -> (i32, i32) {
    %c1_i32 = arith.constant 1 : i32
    %0 = arith.muli %arg0, %c1_i32 : i32
    %1 = arith.addi %0, %arg1 : i32
    %c0_i32 = arith.constant 0 : i32
    %2 = arith.minsi %1, %c0_i32 : i32
    %c0_i32_0 = arith.constant 0 : i32
    %c0_i32_1 = arith.constant 0 : i32
    return %c0_i32_0, %2 : i32, i32
  }
  func.func @transform_2(%arg0: i32, %arg1: i32) -> (i32, i32, i32) {
    %c0_i32 = arith.constant 0 : i32
    %c0_i32_0 = arith.constant 0 : i32
    %c0_i32_1 = arith.constant 0 : i32
    return %arg0, %c0_i32, %c0_i32_0 : i32, i32, i32
  }
}

</mosaic_0001>

<bundles_post_ra>
// kernel: tpu_custom_call.1
= control target key start
LH: loop header
LB: loop body
LE: loop exit
PB: predicated region body
PF: predicated region fallthrough
CT: control target
= control target key end

     0   :  { %7 = vsyncpa [#allocation4], 0  ;;  %s891_s0 = inlined_call_operand.hbm [shape: f32[5,8], index: 0, kind: input, shape index: {}]   ;;  %s892_s1 = inlined_call_operand.hbm [shape: s32[1,8], index: 1, kind: input, shape index: {}]   ;;  %s893_s2 = inlined_call_operand.hbm [shape: f32[2,8,128], index: 2, kind: output, shape index: {}]  }
   0x1   :  { %9 = vsyncpa [#allocation4 + $0x1], 0 }
   0x2   :  { %10 = vsyncpa [#allocation7], 0 }
   0x3   :  { %12 = vsyncpa [#allocation7 + $0x1], 0 }
   0x4   :  { %13 = vsyncpa [#allocation5], 0 }
   0x5   :  { %15 = vsyncpa [#allocation5 + $0x1], 0  ;;  %s718_s9 = smov 0   ;;  %s720_s10 = smov 0  }
   0x6   :  { %s722_s11 = smov 0   ;;  %s724_s12 = smov 0  }
   0x7   :  { %s726_s13 = smov 0   ;;  %s728_s14 = smov 0  }
   0x8   :  { %s730_s15 = smov 0   ;;  %s732_s16 = smov 0  }
   0x9 LB: > { %s420_s17 = sadd.s32 4294967295, %s698_s16   ;;  %s421_s18 = sadd.s32 4294967294, %s698_s16   ;;  %s698_s16 = sphi %s732_s16, %s21_s16   ;;  %s694_s15 = sphi %s730_s15, %s905_s15   ;;  %s690_s14 = sphi %s728_s14, %s904_s14   ;;  %s686_s13 = sphi %s726_s13, %s881_s13   ;;  %s682_s12 = sphi %s724_s12, %s903_s12   ;;  %s678_s11 = sphi %s722_s11, %s902_s11   ;;  %s674_s10 = sphi %s720_s10, %s901_s10   ;;  %s670_s9 = sphi %s718_s9, %s900_s9  }
   0xa   : > { %s33_s19 = sadd.s32 1, %s694_s15  ;;  %p667_p1 = scmp.ne.s32.totalorder %s686_s13, 0 }
   0xb   : > { %p35_p0 = scmp.ge.s32.totalorder %s33_s19, 2  ;;  %p54_p2 = scmp.eq.s32.totalorder %s698_s16, 0 }
   0xc   : > { %p59_p3 = scmp.ne.s32.totalorder %s686_s13, %s682_s12  ;;  %p60_p5 = scmp.eq.s32.totalorder %s420_s17, 0 }
   0xd   : > { %s907_s19 = smov (%p35_p0, %s33_s19), 0  ;;  %p764_p4 = por %p667_p1, %p54_p2 }
   0xe   : > { %p768_p6 = por %p60_p5, %p59_p3  ;;  %s101_s22 = ssub.s32 %s694_s15, %s907_s19 }
   0xf   : > { %p102_p7 = scmp.eq.s32.totalorder %s101_s22, 0  ;;  %s104_s23 = sadd.s32 1, %s678_s11 }
  0x10   : > { %p114_p8 = scmp.ne.s32.totalorder %s678_s11, %s674_s10  ;;  %p115_p9 = scmp.eq.s32.totalorder %s420_s17, 1 }
  0x11   : > { %s776_s24 = scalar_select %p102_p7, %s678_s11, %s104_s23  }
  0x12   : > { %p120_p10 = scmp.ne.s32.totalorder %s674_s10, %s670_s9  ;;  %p121_p11 = scmp.eq.s32.totalorder %s421_s18, 1 }
  0x13   : > { %p782_p12 = por %p115_p9, %p114_p8  ;;  %p423_p13 = scmp.ge.s32.totalorder %s698_s16, 2 }
  0x14   : > { %p787_p0 = por %p121_p11, %p120_p10  ;;  %p451_p1 = scmp.lt.s32.totalorder %s698_s16, 2 }
  0x15   : > { %s154_s29 = sshll.u32 %s891_s0, 4  ;;  %s700_s30 = smov [#allocation3]   ;;  %s155_s29 = int_to_ptr.hbm [resolvable:$true] %s154_s29 }
  0x16   : > { %s156_s3 = sshll.u32 %s700_s30, 4  ;;  %p797_p2 = pnand %p451_p1, %p764_p4  ;;  %s157_s3 = int_to_ptr.vmem [resolvable:$true] %s156_s3 }
  0x17   : > { %p426_p3 = scmp.ge.s32.totalorder %s698_s16, 1  ;;  %p181_p5 = scmp.lt.s32.totalorder %s698_s16, 3 }
  0x18   : > { %s531_s5 = sshra.s32 %s155_s29, 4  ;;  %p535_p8 = pneg %p797_p2  ;;  %s532_s5 = int_to_ptr.hbm [resolvable:$true] %s531_s5 }
  0x19   : > { %s533_s6 = scalar_lea.hbm %s532_s5, 8  ;;  %s538_s12 = scalar_lea.hbm %s891_s0, 8 }
  0x1a   : > { %p534_p7 = scmp.ne.s32.totalorder %s532_s5, %s533_s6  ;;  %p540_p4 = scmp.lt.s32.totalorder %s538_s12, %s533_s6 }
  0x1c   : > { %p536_p9 = pnand %p535_p8, %p534_p7 }
  0x1e   : > { %p537_p10 = pneg %p536_p9 }
  0x20   : > { %p542_p11 = pnand %p540_p4, %p537_p10 }
  0x22   : > { %545 = shalt.err (!%p542_p11)
}
  0x23   : > { %443 = dma.hbm_to_vmem [thread:$0]  (!%p797_p2), %s155_s29, 128, %s157_s3, [#allocation4]  }
  0x24   : > { %p817_p1 = pnand %p426_p3, %p181_p5  ;;  %s174_s22 = sshll.u32 %s892_s1, 4  ;;  %s175_s22 = int_to_ptr.hbm [resolvable:$true] %s174_s22 }
  0x25   : > { %s701_s23 = smov [#allocation6]   ;;  %s561_s28 = sshra.s32 %s175_s22, 4  ;;  %s562_s28 = int_to_ptr.hbm [resolvable:$true] %s561_s28 }
  0x26   : > { %s176_s27 = sshll.u32 %s701_s23, 4  ;;  %s563_s30 = scalar_lea.hbm %s562_s28, 1  ;;  %s177_s27 = int_to_ptr.vmem [resolvable:$true] %s176_s27 }
  0x27   : > { %p564_p7 = scmp.ne.s32.totalorder %s562_s28, %s563_s30  ;;  %s568_s5 = scalar_lea.hbm %s892_s1, 1 }
  0x28   : > { %p570_p3 = scmp.lt.s32.totalorder %s568_s5, %s563_s30 }
  0x29   : > { %p566_p9 = pnand %p564_p7, %p535_p8 }
  0x2b   : > { %p567_p10 = pneg %p566_p9 }
  0x2d   : > { %p572_p5 = pnand %p570_p3, %p567_p10 }
  0x2f   : > { %575 = shalt.err (!%p572_p5)
}
  0x30   : > { %446 = dma.hbm_to_vmem [thread:$0]  (!%p797_p2), %s175_s22, 16, %s177_s27, [#allocation7]  }
  0x31   : > { %185 = sbr.rel (%p817_p1) target bundleno = 249 (0xf9), region = 28  ;;  %s187_s6 = sand.u32 (!%p817_p1), 1, %s686_s13  }
  0x32   : > { %s427_s7 = sshll.u32 (!%p817_p1), %s187_s6, 3  ;;  %s188_s8 = scalar_lea.sflag (!%p817_p1), [#allocation4], %s187_s6 }
  0x33   : > { %s191_s12 = scalar_lea.vmem (!%p817_p1), [#allocation3], %s427_s7 }
  0x36   : > { %656 = dma.done.wait (%p768_p6), %s188_s8, 128  }
  0x37   : > { %658 = vsyncadd (%p768_p6), %s188_s8, 4294967168  ;;  %s198_s18 = scalar_lea.sflag [#allocation7], %s187_s6  ;;  %s200_s20 = scalar_lea.vmem [#allocation6], %s187_s6 }
  0x38   : > { %660 = dma.done.wait (%p768_p6), %s198_s18, 16  }
  0x39   : > { %662 = vsyncadd (%p768_p6), %s198_s18, 4294967280  ;;  %v702_v0 = vmov 0.0   ;;  %vm239_vm0 = vcmask 1044480   ;;  %v237_v1 = vld [vmem:[%s191_s12] sm:$0x1f]  ;;  %v266_v7 = vlaneseq  ;;  %s429_s21 = sshll.u32 %s690_s14, 7 }
  0x3a   : > { %236 = vst [vmem:[#allocation2] sm:$0x1] %v702_v0  ;;  %v240_v2 = vsel %vm239_vm0, %v237_v1, -inf  ;;  %v526_v11 = vld [vmem:[%s200_s20] ss:$0 sm:$0xff]  ;;  %v288_v41 = vstv %s429_s21  ;;  %vm299_vm3 = vcmask 1040384  }
  0x3b   : > { %v241_v3 = vrot.slane %v240_v2, 4  ;;  %v267_v10 = vshrl.u32 %v266_v7, 7  ;;  %v287_v39 = vand.u32 127, %v266_v7  ;;  %s223_s4 = sand.u32 1, %s674_s10   ;;  %s431_s22 = sshll.u32 %s690_s14, 3 }
  0x3c   : > { %s428_s17 = sshll.u32 %s223_s4, 3  ;;  %s318_s28 = scalar_lea.hbm %s893_s2, %s431_s22 }
  0x3d   : > { %v242_v4 = vmax.f32 %v240_v2, %v241_v3  ;;  %vm269_vm1 = vcmp.eq.s32.totalorder %v267_v10, %v526_v11  ;;  %v289_v44 = vadd.s32 %v288_v41, %v287_v39  ;;  %s225_s30 = scalar_lea.vmem [#allocation8], %s428_s17  ;;  %s322_s3 = sshll.u32 %s318_s28, 4  ;;  %s323_s3 = int_to_ptr.hbm [resolvable:$true] %s322_s3 }
  0x3e   : > { %s320_s29 = sshll.u32 %s225_s30, 4  ;;  %s308_s5 = scalar_lea.sflag [#allocation5], %s223_s4  ;;  %s321_s29 = int_to_ptr.vmem [resolvable:$true] %s320_s29 }
  0x3f   : > { %v243_v5 = vrot.slane %v242_v4, 2  ;;  %vm290_vm2 = vcmp.lt.s32.totalorder %v289_v44, 8  ;;  %s605_s6 = sshra.s32 %s323_s3, 4  ;;  %s611_s12 = scalar_lea.hbm %s893_s2, 16  ;;  %s606_s6 = int_to_ptr.hbm [resolvable:$true] %s605_s6 }
  0x40   : > { %s607_s7 = scalar_lea.hbm %s606_s6, 8  ;;  %p612_p4 = scmp.lt.s32.totalorder %s606_s6, %s893_s2 }
  0x41   : > { %v244_v6 = vmax.f32 %v242_v4, %v243_v5  ;;  %v292_v48 = vld [vmem:[#allocation2] sm:$0x1]  ;;  %p608_p6 = scmp.ne.s32.totalorder %s606_s6, %s607_s7  ;;  %p613_p11 = scmp.lt.s32.totalorder %s611_s12, %s607_s7 }
  0x43   : > { %v245_v8 = vrot.slane %v244_v6, 1  ;;  %p609_p2 = pnand %p608_p6, %p782_p12  ;;  %p614_p1 = por %p613_p11, %p612_p4 }
  0x45   : > { %v246_v9 = vmax.f32 %v244_v6, %v245_v8  ;;  %p610_p8 = pneg %p609_p2 }
  0x47   : > { %v247_v12 = vsub.f32 %v237_v1, %v246_v9  ;;  %p615_p7 = pnand %p614_p1, %p610_p8 }
  0x49   : > { %v248_v13 = vmul.f32 1.442695, %v247_v12  ;;  %v270_v14 = vsel %vm269_vm1, %v247_v12, 0.0  ;;  %v259_v15 = vsel %vm239_vm0, %v247_v12, 0.0 }
  0x4a   : > { %v271_v16 = vsel %vm239_vm0, %v270_v14, 0.0  ;;  %v260_v19 = vrot.slane %v259_v15, 4 }
  0x4b   : > { %527 = vpow2.f32 %v248_v13  ;;  %v272_v20 = vrot.slane %v271_v16, 4 }
  0x4c   : > { %v261_v23 = vadd.f32 %v260_v19, %v259_v15 }
  0x4d   : > { %v273_v24 = vadd.f32 %v272_v20, %v271_v16 }
  0x4e   : > { %v262_v27 = vrot.slane %v261_v23, 2 }
  0x4f   : > { %v274_v28 = vrot.slane %v273_v24, 2 }
  0x50   : > { %v263_v31 = vadd.f32 %v262_v27, %v261_v23 }
  0x51   : > { %v528_v17 = vpop.eup %527  ;;  %v275_v32 = vadd.f32 %v274_v28, %v273_v24 }
  0x52   : > { %v250_v18 = vsel %vm239_vm0, %v528_v17, 0.0  ;;  %v264_v33 = vrot.slane %v263_v31, 1 }
  0x53   : > { %v251_v21 = vrot.slane %v250_v18, 4  ;;  %v276_v34 = vrot.slane %v275_v32, 1 }
  0x54   : > { %v265_v37 = vadd.f32 %v264_v33, %v263_v31 }
  0x55   : > { %v252_v22 = vadd.f32 %v251_v21, %v250_v18  ;;  %v277_v38 = vadd.f32 %v276_v34, %v275_v32 }
  0x57   : > { %v253_v25 = vrot.slane %v252_v22, 2 }
  0x59   : > { %v254_v26 = vadd.f32 %v253_v25, %v252_v22 }
  0x5b   : > { %v255_v29 = vrot.slane %v254_v26, 1 }
  0x5d   : > { %v256_v30 = vadd.f32 %v255_v29, %v254_v26 }
  0x5f   : > { %529 = vlog2.f32 %v256_v30 }
  0x65   : > { %v530_v35 = vpop.eup %529 }
  0x66   : > { %v258_v36 = vmul.f32 0.6931472, %v530_v35 }
  0x68   : > { %v278_v40 = vmul.f32 5.0, %v258_v36  ;;  %v281_v43 = vsub.f32 %v277_v38, %v258_v36 }
  0x6a   : > { %v279_v42 = vsub.f32 %v265_v37, %v278_v40 }
  0x6c   : > { %v280_v45 = vmul.f32 0.0, %v279_v42 }
  0x6e   : > { %v282_v46 = vadd.f32 %v281_v43, %v280_v45 }
  0x70   : > { %v283_v47 = vsub.f32 0.0, %v282_v46 }
  0x72   : > { %v291_v49 = vsel %vm290_vm2, %v283_v47, 0.0 }
  0x73   : > { %v293_v50 = vadd.f32 %v292_v48, %v291_v49 }
  0x75   : > { %294 = vst [vmem:[#allocation2] sm:$0x1] %v293_v50 }
  0x7c   : > { %v298_v51 = vld [vmem:[#allocation2] sm:$0x1] }
  0x7d   : > { %v300_v52 = vsel %vm299_vm3, %v298_v51, 0.0 }
  0x7e   : > { %301 = vadd.xlane.f32.xlu0 %v300_v52 }
  0xf1   : > { %v302_v53 = vpop.xlane.xlu0 %301 }
  0xf2   : > { %v303_v54 = vmul.f32 0.125, %v302_v53 }
  0xf4   : > { %v304_v55 = vperm.slane %v303_v54, 0 }
  0xf6   : > { %306 = vst [vmem:[%s225_s30] sm:$0xff] %v304_v55 }
  0xf7   : > { %618 = shalt.err (!%p615_p7)
}
  0xf8   : > { %438 = dma.vmem_to_hbm [thread:$0]  (%p782_p12), %s321_s29, 128, %s323_s3, %s308_s5  }
  0xf9 PF: > { %s334_s21 = sand.u32 1, %s670_s9   ;;  %p448_p9 = pnand %p423_p13, %p787_p0 }
  0xfa   : > { %s335_s4 = scalar_lea.sflag [#allocation5], %s334_s21 }
  0xfb   : > { %p449_p10 = pneg %p448_p9 }
  0xfd   : > { %664 = dma.done.wait (%p449_p10), %s335_s4, 128  }
  0xfe   : > { %666 = vsyncadd (%p449_p10), %s335_s4, 4294967168  ;;  %s21_s16 = sadd.s32 1, %s698_s16   ;;  %s900_s9 = smov %s674_s10 }
  0xff   : > { %p18_p3 = scmp.ge.s32.totalorder %s21_s16, 4   ;;  %s901_s10 = smov %s678_s11 }
 0x100   : > { %s902_s11 = smov %s776_s24  ;;  %s903_s12 = smov %s686_s13 }
 0x101   : > { %s881_s13 = smov 0   ;;  %s904_s14 = smov %s694_s15 }
 0x102   : > { %s905_s15 = smov %s907_s19  ;;  %20 = sbr.rel (!%p18_p3) target bundleno = 9 (0x9), region = 94 }
 0x107   :  { %341 = vsyncpa [#allocation4], 1 }
 0x108   :  { %343 = vsyncpa [#allocation4 + $0x1], 1 }
 0x109   :  { %344 = vsyncpa [#allocation7], 1 }
 0x10a   :  { %346 = vsyncpa [#allocation7 + $0x1], 1 }
 0x10b   :  { %347 = vsyncpa [#allocation5], 1 }
 0x10c   :  { %349 = vsyncpa [#allocation5 + $0x1], 1 }

</bundles_post_ra>
